<compile_context>
chip_gen: v7x
topology: tpu7x:2x2x1
jax: 0.10.0
libtpu: 0.0.40
codegen_flags: <defaults>
</compile_context>

<pallas_src>
import jax
import jax.numpy as jnp
from jax.experimental import pallas as pl
from jax.experimental.pallas import tpu as pltpu


# ----------------------------------------------------------------------------
# Sizing helpers
# ----------------------------------------------------------------------------
def _vmem_budget():
    """(vmem_limit_bytes, per-block byte budget) derived from the device."""
    cap = 64 * 1024 * 1024                      # conservative default (v7x)
    try:
        cap = int(pltpu.get_tpu_info().vmem_capacity_bytes)
    except Exception:
        pass
    # ~3/4 of physical VMEM: 48 MiB on v7x (64 MiB), 96 MiB on v5e/v6e (128 MiB).
    vmem_limit = max(32 * 1024 * 1024, min((cap * 3) // 4, 96 * 1024 * 1024))
    # 2x(in) + 2x(out) double buffers per block, plus a small margin for temps.
    block_budget = (vmem_limit - 4 * 1024 * 1024) // 4
    return vmem_limit, block_budget


def _pick_batch_tile(B, per_batch_bytes, target_bytes):
    """Pack batch elements so each block is ~target_bytes, keeping >=2
    (preferably >=4) grid steps when B allows so both v7x TensorCores get work."""
    bt = int(max(1, min(B, target_bytes // max(1, per_batch_bytes))))
    min_steps = 4 if B >= 4 else (2 if B >= 2 else 1)
    bt = min(bt, max(1, B // min_steps))
    while B % bt:
        bt -= 1
    return bt


def _pick_lane_chunk(hw, rows, max_bytes=2 << 20, max_unroll=32):
    """Lane-axis chunk for in-kernel strip-mining: bounds per-chunk f32
    temporaries to ~max_bytes and the unroll count to ~max_unroll."""
    by_bytes = max(1, max_bytes // max(1, rows * 4))
    by_unroll = -(-hw // max_unroll)
    chunk = max(by_bytes, by_unroll, 128)
    chunk = -(-chunk // 128) * 128              # lane-aligned
    return min(chunk, hw)


def _pick_hw_tile(hw, C, itemsize, block_budget, force=None):
    """HW tile for the two-pass fallback: multiple of 128 (or the full HW)."""
    if force is not None:
        thw = int(force)
    else:
        target = min(4 * 1024 * 1024, block_budget)
        thw = max(128, ((target // max(1, C * itemsize)) // 128) * 128)
    return hw if thw >= hw else thw


# ----------------------------------------------------------------------------
# Single-pass kernel: pool + conv + sigmoid + gate, one grid step per batch tile
# ----------------------------------------------------------------------------
def _make_eca_kernel(hw, chunk, k_size):
    pad = (k_size - 1) // 2

    def kernel(w_ref, x_ref, o_ref, yp_ref):
        # w_ref : SMEM (k,)            conv taps (scalar prefetch)
        # x_ref : VMEM (bt, C, HW)     input tile (native dtype)
        # o_ref : VMEM (bt, C, HW)     output tile
        # yp_ref: VMEM (bt, C+2p, 1)   tiny zero-padded pooled vector (f32)
        bt, C, _ = x_ref.shape

        # Global average pool, strip-mined over lane chunks with f32 accumulation
        # (no full-tile f32 copy of x is ever materialized).
        acc = jnp.zeros((bt, C, 1), jnp.float32)
        j = 0
        while j < hw:
            c = min(chunk, hw - j)
            acc = acc + jnp.sum(x_ref[:, :, j:j + c], axis=-1, keepdims=True,
                                dtype=jnp.float32)
            j += c
        y = acc * (1.0 / hw)                                   # (bt, C, 1)

        # k-tap Conv1d along channels on the pooled vector: zero-padded tiny
        # scratch + k statically shifted sublane reads weighted by SMEM scalars.
        yp_ref[...] = jnp.zeros_like(yp_ref)
        yp_ref[:, pad:pad + C, :] = y
        yc = w_ref[0] * yp_ref[:, 0:C, :]
        for t in range(1, k_size):
            yc = yc + w_ref[t] * yp_ref[:, t:t + C, :]

        s = jax.nn.sigmoid(yc)                                 # (bt, C, 1) f32
        if o_ref.dtype != jnp.float32:
            s = s.astype(o_ref.dtype)                          # gate down-cast

        # Gate, strip-mined so temporaries stay O(chunk); lane-dense stores.
        j = 0
        while j < hw:
            c = min(chunk, hw - j)
            o_ref[:, :, j:j + c] = x_ref[:, :, j:j + c] * s
            j += c

    return kernel


def _eca_single_pass(xf, w, k_size, vmem_limit, block_budget):
    B, C, HW = xf.shape
    pad = (k_size - 1) // 2
    itemsize = jnp.dtype(xf.dtype).itemsize
    per_batch = C * HW * itemsize
    target = min(8 * 1024 * 1024, block_budget)
    bt = _pick_batch_tile(B, per_batch, target)
    chunk = _pick_lane_chunk(HW, bt * C)

    return pl.pallas_call(
        _make_eca_kernel(HW, chunk, k_size),
        out_shape=jax.ShapeDtypeStruct((B, C, HW), xf.dtype),
        grid_spec=pltpu.PrefetchScalarGridSpec(
            num_scalar_prefetch=1,
            grid=(B // bt,),
            in_specs=[pl.BlockSpec((bt, C, HW), lambda b, w_sm: (b, 0, 0))],
            out_specs=pl.BlockSpec((bt, C, HW), lambda b, w_sm: (b, 0, 0)),
            scratch_shapes=[pltpu.VMEM((bt, C + 2 * pad, 1), jnp.float32)],
        ),
        compiler_params=pltpu.CompilerParams(
            dimension_semantics=("parallel",),
            vmem_limit_bytes=vmem_limit,
        ),
    )(w, xf)


# ----------------------------------------------------------------------------
# Two-pass fallback: (1) pool+conv+sigmoid tiled over HW, (2) gating tiled over HW
# Used when a single sample's (C, HW) slab exceeds the per-block VMEM budget.
# ----------------------------------------------------------------------------
def _make_pool_kernel(hw, thw, k_size):
    pad = (k_size - 1) // 2
    needs_mask = (hw % thw) != 0

    def kernel(w_ref, x_ref, g_ref, acc_ref):
        # acc_ref: VMEM (1, C+2p, 1) f32, zero pads double as the conv padding.
        h = pl.program_id(1)

        @pl.when(h == 0)
        def _():
            acc_ref[...] = jnp.zeros_like(acc_ref)

        x = x_ref[...]
        C = x.shape[1]
        if needs_mask:
            lane = jax.lax.broadcasted_iota(jnp.int32, x.shape, 2)
            x = jnp.where(h * thw + lane < hw, x, jnp.zeros_like(x))
        acc_ref[:, pad:pad + C, :] += jnp.sum(x, axis=-1, keepdims=True,
                                              dtype=jnp.float32)

        @pl.when(h == pl.num_programs(1) - 1)
        def _():
            yp = acc_ref[...] * (1.0 / hw)                     # padded pooled mean
            yc = w_ref[0] * yp[:, 0:C, :]
            for t in range(1, k_size):
                yc = yc + w_ref[t] * yp[:, t:t + C, :]
            g_ref[...] = jax.nn.sigmoid(yc)                    # (1, C, 1) f32

    return kernel


def _apply_kernel(x_ref, g_ref, o_ref):
    s = g_ref[...]
    if o_ref.dtype != jnp.float32:
        s = s.astype(o_ref.dtype)
    o_ref[...] = x_ref[...] * s


def _eca_two_pass(xf, w, k_size, vmem_limit, block_budget, force_thw=None):
    B, C, HW = xf.shape
    pad = (k_size - 1) // 2
    itemsize = jnp.dtype(xf.dtype).itemsize
    thw = _pick_hw_tile(HW, C, itemsize, block_budget, force_thw)
    n_hw = pl.cdiv(HW, thw)

    gate = pl.pallas_call(
        _make_pool_kernel(HW, thw, k_size),
        out_shape=jax.ShapeDtypeStruct((B, C, 1), jnp.float32),
        grid_spec=pltpu.PrefetchScalarGridSpec(
            num_scalar_prefetch=1,
            grid=(B, n_hw),
            in_specs=[pl.BlockSpec((1, C, thw), lambda b, h, w_sm: (b, 0, h))],
            out_specs=pl.BlockSpec((1, C, 1), lambda b, h, w_sm: (b, 0, 0)),
            scratch_shapes=[pltpu.VMEM((1, C + 2 * pad, 1), jnp.float32)],
        ),
        compiler_params=pltpu.CompilerParams(
            dimension_semantics=("parallel", "arbitrary"),
            vmem_limit_bytes=vmem_limit,
        ),
    )(w, xf)

    return pl.pallas_call(
        _apply_kernel,
        out_shape=jax.ShapeDtypeStruct((B, C, HW), xf.dtype),
        grid=(B, n_hw),
        in_specs=[pl.BlockSpec((1, C, thw), lambda b, h: (b, 0, h)),
                  pl.BlockSpec((1, C, 1), lambda b, h: (b, 0, 0))],
        out_specs=pl.BlockSpec((1, C, thw), lambda b, h: (b, 0, h)),
        compiler_params=pltpu.CompilerParams(
            dimension_semantics=("parallel", "parallel"),
            vmem_limit_bytes=vmem_limit,
        ),
    )(xf, gate)


# ----------------------------------------------------------------------------
# Public wrapper + reference
# ----------------------------------------------------------------------------
def eca_layer(x, conv_w, k_size=3, *, force_two_pass=False, _force_thw=None):
    """x: (B, C, H, W); conv_w: Conv1d(1, 1, k, bias=False) weight (flattens to (k,))."""
    B, C, H, W = x.shape
    HW = H * W
    w = jnp.asarray(conv_w, dtype=jnp.float32).reshape(-1)
    assert w.shape[0] == k_size

    xf = x.reshape(B, C, HW)                     # lane-dense flattened spatial axis
    itemsize = jnp.dtype(x.dtype).itemsize
    per_batch = C * HW * itemsize
    vmem_limit, block_budget = _vmem_budget()

    if force_two_pass or per_batch > block_budget:
        out = _eca_two_pass(xf, w, k_size, vmem_limit, block_budget, _force_thw)
    else:
        out = _eca_single_pass(xf, w, k_size, vmem_limit, block_budget)
    return out.reshape(B, C, H, W)


def eca_ref(x, conv_w, k_size=3):
    """Pure-JAX reference mirroring the PyTorch forward pass."""
    B, C, H, W = x.shape
    pad = (k_size - 1) // 2
    w = jnp.asarray(conv_w, dtype=jnp.float32).reshape(-1)
    y = jnp.mean(x.astype(jnp.float32), axis=(2, 3))           # (B, C)
    yp = jnp.pad(y, ((0, 0), (pad, pad)))
    out = jnp.zeros_like(y)
    for t in range(k_size):
        out = out + w[t] * yp[:, t:t + C]
    s = jax.nn.sigmoid(out)
    return (x.astype(jnp.float32) * s[:, :, None, None]).astype(x.dtype)


if __name__ == "__main__":
    k_size = 3
    key = jax.random.PRNGKey(0)
    kx, kw, kx2, kx3 = jax.random.split(key, 4)
    conv_w = jax.random.normal(kw, (k_size,), dtype=jnp.float32) * 0.5

    # 1) f32 input, single-pass path.
    x = jax.random.normal(kx, (2, 4, 16, 16), dtype=jnp.float32)
    out = jax.block_until_ready(eca_layer(x, conv_w, k_size=k_size))
    ref = eca_ref(x, conv_w, k_size=k_size)
    assert out.shape == x.shape and out.dtype == x.dtype
    assert jnp.allclose(out, ref, atol=1e-5, rtol=1e-5), "f32 single-pass mismatch"

    # 2) bf16 input, single-pass path (gate applied in bf16 -> bf16 tolerances).
    xb = jax.random.normal(kx2, (2, 4, 16, 16), dtype=jnp.float32).astype(jnp.bfloat16)
    outb = jax.block_until_ready(eca_layer(xb, conv_w, k_size=k_size))
    refb = eca_ref(xb, conv_w, k_size=k_size)
    assert outb.dtype == jnp.bfloat16
    assert jnp.allclose(outb.astype(jnp.float32), refb.astype(jnp.float32),
                        atol=2e-2, rtol=2e-2), "bf16 single-pass mismatch"

    # 3) Forced two-pass fallback (exercises HW tiling + ragged tail masking).
    x2 = jax.random.normal(kx3, (2, 8, 24, 24), dtype=jnp.float32)
    out2 = jax.block_until_ready(
        eca_layer(x2, conv_w, k_size=k_size, force_two_pass=True, _force_thw=128))
    ref2 = eca_ref(x2, conv_w, k_size=k_size)
    assert jnp.allclose(out2, ref2, atol=1e-5, rtol=1e-5), "two-pass mismatch"

    print("KERNEL_OK")
</pallas_src>

<mosaic_0001>
module attributes {stable_mosaic.version = 11 : i64} {
  func.func @kernel(%arg0: i32, %arg1: memref<3xf32, #tpu.memory_space<smem>>, %arg2: memref<1x4x256xf32, #tpu.memory_space<vmem>>, %arg3: memref<1x4x256xf32, #tpu.memory_space<vmem>>, %arg4: memref<1x6x1xf32, #tpu.memory_space<vmem>>) attributes {dimension_semantics = [#tpu.dimension_semantics<parallel>], iteration_bounds = array<i64: 2>, scalar_prefetch = 1 : i64, scratch_operands = 1 : i64, tpu.core_type = #tpu.core_type<tc>, window_params = [{transform_indices = @transform_0, window_bounds = array<i64: 1, 4, 256>}, {transform_indices = @transform_1, window_bounds = array<i64: 1, 4, 256>}]} {
    %cst = arith.constant 0.000000e+00 : f32
    %0 = vector.broadcast %cst : f32 to vector<1x4x1xf32>
    %c0 = arith.constant 0 : index
    %c0_0 = arith.constant 0 : index
    %c0_1 = arith.constant 0 : index
    %1 = vector.load %arg2[%c0, %c0_0, %c0_1] : memref<1x4x256xf32, #tpu.memory_space<vmem>>, vector<1x4x256xf32>
    %cst_2 = arith.constant dense<0.000000e+00> : vector<1x4xf32>
    %2 = vector.multi_reduction <add>, %1, %cst_2 [2] : vector<1x4x256xf32> to vector<1x4xf32>
    %3 = vector.shape_cast %2 : vector<1x4xf32> to vector<1x4x1xf32>
    %4 = arith.addf %0, %3 : vector<1x4x1xf32>
    %cst_3 = arith.constant 3.906250e-03 : f32
    %5 = vector.broadcast %cst_3 : f32 to vector<1x4x1xf32>
    %6 = arith.mulf %4, %5 : vector<1x4x1xf32>
    %cst_4 = arith.constant 0.000000e+00 : f32
    %7 = vector.broadcast %cst_4 : f32 to vector<1x6x1xf32>
    %c0_5 = arith.constant 0 : index
    %c0_6 = arith.constant 0 : index
    %c0_7 = arith.constant 0 : index
    %8 = vector.load %arg4[%c0_5, %c0_6, %c0_7] : memref<1x6x1xf32, #tpu.memory_space<vmem>>, vector<1x6x1xf32>
    tpu.vector_store %arg4[%c0_5, %c0_6, %c0_7], %7 {strides = array<i32>} : memref<1x6x1xf32, #tpu.memory_space<vmem>>, vector<1x6x1xf32>,
    %c0_8 = arith.constant 0 : index
    %c1 = arith.constant 1 : index
    %c0_9 = arith.constant 0 : index
    %9 = vector.load %arg4[%c0_8, %c1, %c0_9] : memref<1x6x1xf32, #tpu.memory_space<vmem>>, vector<1x4x1xf32>
    tpu.vector_store %arg4[%c0_8, %c1, %c0_9], %6 {strides = array<i32>} : memref<1x6x1xf32, #tpu.memory_space<vmem>>, vector<1x4x1xf32>,
    %c0_10 = arith.constant 0 : index
    %10 = memref.load %arg1[%c0_10] : memref<3xf32, #tpu.memory_space<smem>>
    %c0_11 = arith.constant 0 : index
    %c0_12 = arith.constant 0 : index
    %c0_13 = arith.constant 0 : index
    %11 = vector.load %arg4[%c0_11, %c0_12, %c0_13] : memref<1x6x1xf32, #tpu.memory_space<vmem>>, vector<1x4x1xf32>
    %12 = vector.broadcast %10 : f32 to vector<1x4x1xf32>
    %13 = arith.mulf %12, %11 : vector<1x4x1xf32>
    %c1_14 = arith.constant 1 : index
    %14 = memref.load %arg1[%c1_14] : memref<3xf32, #tpu.memory_space<smem>>
    %c0_15 = arith.constant 0 : index
    %c1_16 = arith.constant 1 : index
    %c0_17 = arith.constant 0 : index
    %15 = vector.load %arg4[%c0_15, %c1_16, %c0_17] : memref<1x6x1xf32, #tpu.memory_space<vmem>>, vector<1x4x1xf32>
    %16 = vector.broadcast %14 : f32 to vector<1x4x1xf32>
    %17 = arith.mulf %16, %15 : vector<1x4x1xf32>
    %18 = arith.addf %13, %17 : vector<1x4x1xf32>
    %c2 = arith.constant 2 : index
    %19 = memref.load %arg1[%c2] : memref<3xf32, #tpu.memory_space<smem>>
    %c0_18 = arith.constant 0 : index
    %c2_19 = arith.constant 2 : index
    %c0_20 = arith.constant 0 : index
    %20 = vector.load %arg4[%c0_18, %c2_19, %c0_20] : memref<1x6x1xf32, #tpu.memory_space<vmem>>, vector<1x4x1xf32>
    %21 = vector.broadcast %19 : f32 to vector<1x4x1xf32>
    %22 = arith.mulf %21, %20 : vector<1x4x1xf32>
    %23 = arith.addf %18, %22 : vector<1x4x1xf32>
    %24 = arith.negf %23 : vector<1x4x1xf32>
    %25 = math.exp %24 : vector<1x4x1xf32>
    %cst_21 = arith.constant 1.000000e+00 : f32
    %26 = vector.broadcast %cst_21 : f32 to vector<1x4x1xf32>
    %27 = arith.addf %26, %25 : vector<1x4x1xf32>
    %28 = arith.divf %26, %27 : vector<1x4x1xf32>
    %c0_22 = arith.constant 0 : index
    %c0_23 = arith.constant 0 : index
    %c0_24 = arith.constant 0 : index
    %29 = vector.load %arg2[%c0_22, %c0_23, %c0_24] : memref<1x4x256xf32, #tpu.memory_space<vmem>>, vector<1x4x256xf32>
    %30 = vector.broadcast %28 : vector<1x4x1xf32> to vector<1x4x256xf32>
    %31 = arith.mulf %29, %30 : vector<1x4x256xf32>
    %c0_25 = arith.constant 0 : index
    %c0_26 = arith.constant 0 : index
    %c0_27 = arith.constant 0 : index
    %32 = vector.load %arg3[%c0_25, %c0_26, %c0_27] : memref<1x4x256xf32, #tpu.memory_space<vmem>>, vector<1x4x256xf32>
    tpu.vector_store %arg3[%c0_25, %c0_26, %c0_27], %31 {strides = array<i32>} : memref<1x4x256xf32, #tpu.memory_space<vmem>>, vector<1x4x256xf32>,
    return
  }
  func.func @transform_0(%arg0: i32, %arg1: memref<3xf32, #tpu.memory_space<smem>>) -> (i32, i32, i32) {
    %c0_i32 = arith.constant 0 : i32
    %c0_i32_0 = arith.constant 0 : i32
    %c0_i32_1 = arith.constant 0 : i32
    return %arg0, %c0_i32, %c0_i32_0 : i32, i32, i32
  }
  func.func @transform_1(%arg0: i32, %arg1: memref<3xf32, #tpu.memory_space<smem>>) -> (i32, i32, i32) {
    %c0_i32 = arith.constant 0 : i32
    %c0_i32_0 = arith.constant 0 : i32
    %c0_i32_1 = arith.constant 0 : i32
    return %arg0, %c0_i32, %c0_i32_0 : i32, i32, i32
  }
}

</mosaic_0001>

<bundles_post_ra>
// kernel: tpu_custom_call.1
= control target key start
LH: loop header
LB: loop body
LE: loop exit
PB: predicated region body
PF: predicated region fallthrough
CT: control target
= control target key end

     0   :  { %s657_s0 = inlined_call_operand.hbm [shape: f32[3], index: 0, kind: input, shape index: {}]   ;;  %s658_s1 = inlined_call_operand.hbm [shape: f32[2,4,256], index: 1, kind: input, shape index: {}]   ;;  %s659_s2 = inlined_call_operand.hbm [shape: f32[2,4,256], index: 2, kind: output, shape index: {}]  }
   0x1   :  { %s349_s11 = scalar_lea.hbm %s657_s0, 16 }
   0x2   :  { %p350_p0 = scmp.ne.s32.totalorder %s657_s0, %s349_s11  ;;  %p353_p1 = scmp.lt.u32.totalorder %s349_s11, %s657_s0 }
   0x4   :  { %p355_p2 = pnand %p353_p1, %p350_p0 }
   0x6   :  { %358 = shalt.err (!%p355_p2)  }
   0x7   :  { %s459_s16 = smov [#allocation4]  }
   0x8   :  { %8 = dma.hbm_to_smem %s657_s0, 16, %s459_s16, [#allocation3] }
   0x9   :  { %433 = dma.done.wait [#allocation3], 16 }
   0xa   :  { %434 = vsyncadd [#allocation3], 4294967280 }
   0xb   :  { %10 = sfence }
   0xc   :  { %11 = vsyncpa [#allocation6], 0 }
   0xd   :  { %13 = vsyncpa [#allocation6 + $0x1], 0 }
   0xe   :  { %14 = vsyncpa [#allocation7], 0 }
   0xf   :  { %16 = vsyncpa [#allocation7 + $0x1], 0  ;;  %s492_s19 = smov 0   ;;  %s494_s20 = smov 0  }
  0x10   :  { %s496_s21 = smov 0   ;;  %s498_s22 = smov 0  }
  0x11 LB: > { %s513_s0 = sadd.s32 4294967295, %s457_s22   ;;  %s274_s23 = sadd.s32 4294967294, %s457_s22   ;;  %s457_s22 = sphi %s498_s22, %s674_s22   ;;  %s453_s21 = sphi %s496_s21, %s673_s21   ;;  %s449_s20 = sphi %s494_s20, %s672_s20   ;;  %s445_s19 = sphi %s492_s19, %s671_s19  }
  0x12   : > { %s517_s24 = sadd.s32 1, %s457_s22   ;;  %s29_s25 = sadd.s32 1, %s453_s21 }
  0x13   : > { %s26_s26 = ssub.s32 %s457_s22, %s517_s24  ;;  %p36_p3 = scmp.ne.s32.totalorder %s453_s21, %s449_s20 }
  0x14   : > { %p27_p4 = scmp.eq.s32.totalorder %s26_s26, 0  ;;  %p37_p5 = scmp.eq.s32.totalorder %s457_s22, 0 }
  0x15   : > { %p42_p6 = scmp.ne.s32.totalorder %s449_s20, %s445_s19  ;;  %p43_p7 = scmp.eq.s32.totalorder %s513_s0, 0 }
  0x16   : > { %s529_s27 = scalar_select %p27_p4, %s453_s21, %s29_s25  }
  0x17   : > { %p531_p8 = por %p37_p5, %p36_p3  ;;  %p535_p9 = por %p43_p7, %p42_p6 }
  0x18   : > { %p66_p10 = scmp.eq.s32.totalorder %s513_s0, 1  ;;  %p72_p11 = scmp.eq.s32.totalorder %s274_s23, 1 }
  0x19   : > { %p305_p13 = scmp.lt.s32.totalorder %s457_s22, 2  ;;  %s92_s4 = sand.u32 1, %s453_s21  }
  0x1a   : > { %p542_p0 = por %p66_p10, %p36_p3  ;;  %p546_p1 = por %p72_p11, %p42_p6 }
  0x1b   : > { %s291_s5 = sshll.u32 %s457_s22, 7  ;;  %s277_s6 = sshll.u32 %s92_s4, 3 }
  0x1c   : > { %s663_s30 = scalar_select %p542_p0, 1, 0 }
  0x1d   : > { %s664_s3 = scalar_select %p546_p1, 1, 0 }
  0x1e   : > { %s555_s9 = scalar_lea.hbm %s658_s1, %s291_s5  ;;  %s96_s10 = scalar_lea.vmem [#allocation5], %s277_s6 }
  0x1f   : > { %s104_s11 = sshll.u32 %s96_s10, 4  ;;  %p559_p2 = pnand %p305_p13, %p531_p8  ;;  %s563_s11 = int_to_ptr.vmem [resolvable:$true] %s104_s11 }
  0x20   : > { %s93_s13 = scalar_lea.sflag [#allocation6], %s92_s4  ;;  %s359_s14 = scalar_lea.hbm %s555_s9, 128 }
  0x21   : > { %p360_p5 = scmp.ne.s32.totalorder %s555_s9, %s359_s14  ;;  %p361_p6 = pneg %p559_p2 }
  0x22   : > { %s364_s17 = scalar_lea.hbm %s658_s1, 256  ;;  %p365_p8 = scmp.lt.u32.totalorder %s555_s9, %s658_s1 }
  0x23   : > { %p362_p7 = pnand %p361_p6, %p360_p5  ;;  %p366_p11 = scmp.lt.u32.totalorder %s364_s17, %s359_s14 }
  0x24   : > { %p368_p12 = scmp.lt.u32.totalorder %s359_s14, %s555_s9 }
  0x25   : > { %p363_p10 = pneg %p362_p7  ;;  %p367_p13 = por %p366_p11, %p365_p8 }
  0x27   : > { %p369_p3 = por %p368_p12, %p367_p13 }
  0x29   : > { %p370_p4 = pnand %p369_p3, %p363_p10 }
  0x2b   : > { %373 = shalt.err (!%p370_p4)
}
  0x2c   : > { %s374_s25 = scalar_lea.vmem %s563_s11, 128  ;;  %s460_s26 = smov [#allocation5]  }
  0x2d   : > { %p375_p5 = scmp.ne.s32.totalorder %s563_s11, %s374_s25  ;;  %s379_s28 = sshll.u32 %s460_s26, 4  ;;  %s380_s28 = int_to_ptr.vmem [resolvable:$false] %s379_s28 }
  0x2e   : > { %s381_s4 = scalar_lea.vmem %s380_s28, 256  ;;  %p382_p0 = scmp.lt.s32.totalorder %s563_s11, %s380_s28 }
  0x2f   : > { %p377_p7 = pnand %p375_p5, %p361_p6  ;;  %p383_p8 = scmp.lt.s32.totalorder %s381_s4, %s374_s25 }
  0x31   : > { %p378_p1 = pneg %p377_p7  ;;  %p384_p11 = por %p383_p8, %p382_p0 }
  0x33   : > { %p385_p12 = pnand %p384_p11, %p378_p1 }
  0x35   : > { %388 = shalt.err (!%p385_p12)
}
  0x36   : > { %300 = dma.hbm_to_vmem [thread:$0]  (!%p559_p2), %s555_s9, 128, %s563_s11, %s93_s13  }
  0x37   : > { %p666_p3 = scmp.lt.s32.totalorder %s457_s22, 3  ;;  %p667_p4 = scmp.ge.s32.totalorder %s457_s22, 1 }
  0x39   : > { %p110_p6 = pnand %p667_p4, %p666_p3 }
  0x3a   : > { %s597_s5 = sand.u32 (!%p110_p6), 1, %s449_s20  }
  0x3b   : > { %113 = sbr.rel (%p110_p6) target bundleno = 404 (0x194), region = 24  ;;  %s281_s6 = sshll.u32 (!%p110_p6), %s597_s5, 3 }
  0x3c   : > { %s116_s7 = scalar_lea.sflag (!%p110_p6), [#allocation6], %s597_s5  ;;  %s119_s8 = scalar_lea.vmem (!%p110_p6), [#allocation5], %s281_s6 }
  0x42   : > { %436 = dma.done.wait (%p535_p9), %s116_s7, 128  }
  0x43   : > { %438 = vsyncadd (%p535_p9), %s116_s7, 4294967168  ;;  %vm150_vm0 = vcmask 5120   ;;  %v461_v0 = vmov 0.0   ;;  %vm142_vm1 = vcmask 1043456   ;;  %v138_v1 = vld [vmem:[%s119_s8] sm:$0xff]  ;;  %v462_v6 = vmov 0  }
  0x44   : > { %151 = vst.msk [vmem:[#allocation2] sm:$0x3f] %vm150_vm0, %v461_v0  ;;  %v140_v2 = vcombine.high %v138_v1, %v138_v1  ;;  %v143_v3 = vsel %vm142_vm1, %v138_v1, 0.0  ;;  %343 = vset.pattern.permute.xlu0 %v462_v6  ;;  %vm152_vm2 = vcmask 3072   ;;  %s154_s9 = sld [smem:[#allocation4]]  ;;  %s283_s10 = sld [smem:[#allocation4 + $0x1]]  ;;  %v182_v26 = vlaneseq }
  0x45   : > { %s284_s11 = sld [smem:[#allocation4 + $0x2]]  ;;  %v463_v24 = vmov 839922192   ;;  %s292_s29 = sshll.u32 %s513_s0, 7 }
  0x46   : > { %v144_v4 = vsel %vm142_vm1, %v140_v2, 0.0  ;;  %v180_v25 = vunpack.c.l.s4 %v463_v24  ;;  %v183_v28 = vshrl.u32 %v182_v26, 7  ;;  %s137_s12 = scalar_lea.vmem [#allocation8], %s281_s6  ;;  %s613_s16 = scalar_lea.hbm %s659_s2, %s292_s29 }
  0x47   : > { %v145_v5 = vadd.f32 %v144_v4, %v143_v3  ;;  %s204_s13 = sshll.u32 %s137_s12, 4  ;;  %s190_s17 = scalar_lea.sflag [#allocation7], %s597_s5  ;;  %s615_s13 = int_to_ptr.vmem [resolvable:$true] %s204_s13 }
  0x48   : > { %v181_v27 = vunpack.c.0.s8 %v180_v25  ;;  %s389_s18 = scalar_lea.vmem %s615_s13, 128  ;;  %p668_p0 = scmp.ne.s32.totalorder %s663_s30, 0 }
  0x49   : > { %146 = vadd.xlane.f32.xlu0 %v145_v5  ;;  %p390_p9 = scmp.ne.s32.totalorder %s615_s13, %s389_s18  ;;  %s464_s0 = smov [#allocation8]  }
  0x4a   : > { %v156_v9 = vstv %s154_s9  ;;  %v160_v10 = vstv %s283_s10  ;;  %v184_v29 = vsub.s32 %v181_v27, %v183_v28  ;;  %s393_s23 = sshll.u32 %s464_s0, 4  ;;  %s394_s23 = int_to_ptr.vmem [resolvable:$false] %s393_s23 }
  0x4b   : > { %v165_v14 = vstv %s284_s11  ;;  %p391_p1 = pnand %p390_p9, %p668_p0  ;;  %s395_s25 = scalar_lea.vmem %s394_s23, 256 }
  0x4c   : > { %p396_p10 = scmp.lt.s32.totalorder %s615_s13, %s394_s23  ;;  %p397_p13 = scmp.lt.s32.totalorder %s395_s25, %s389_s18 }
  0x4d   : > { %p392_p2 = pneg %p391_p1 }
  0x4e   : > { %p398_p5 = por %p397_p13, %p396_p10 }
  0x50   : > { %p399_p7 = pnand %p398_p5, %p392_p2 }
  0xd6   : > { %v147_v7 = vpop.xlane.xlu0 %146 }
  0xd7   : > { %v149_v8 = vmul.f32 0.00390625, %v147_v7 }
  0xd9   : > { %153 = vst.msk [vmem:[#allocation2 + $0x1] sm:$0xf] %vm152_vm2, %v149_v8 }
  0xe0   : > { %v155_v11 = vld [vmem:[#allocation2] sm:$0xf] }
  0xe1   : > { %v159_v12 = vld [vmem:[#allocation2 + $0x1] sm:$0xf]  ;;  %v157_v15 = vmul.f32 %v156_v9, %v155_v11 }
  0xe2   : > { %v164_v13 = vld [vmem:[#allocation2 + $0x2] sm:$0xf]  ;;  %v161_v16 = vmul.f32 %v160_v10, %v159_v12 }
  0xe3   : > { %v166_v18 = vmul.f32 %v165_v14, %v164_v13 }
  0xe4   : > { %v162_v17 = vadd.f32 %v161_v16, %v157_v15 }
  0xe6   : > { %v167_v19 = vadd.f32 %v166_v18, %v162_v17 }
  0xe8   : > { %v285_v20 = vmul.f32 -1.442695, %v167_v19 }
  0xea   : > { %345 = vpow2.f32 %v285_v20 }
  0xf4   : > { %v346_v21 = vpop.eup %345 }
  0xf5   : > { %v171_v22 = vadd.f32 1.0, %v346_v21 }
  0xf7   : > { %347 = vrcp.f32 %v171_v22 }
 0x101   : > { %v348_v23 = vpop.eup %347 }
 0x102   : > { %177 = vperm.xlu0 %343, %v348_v23  }
 0x181   : > { %v178_v30 = vpop.permute.xlu0 %177 }
 0x182   : > { %v185_v31 = vrot.slane %v178_v30, %v184_v29 }
 0x184   : > { %v187_v32 = vmul.f32 %v185_v31, %v138_v1 }
 0x186   : > { %188 = vst [vmem:[%s137_s12] sm:$0xff] %v187_v32 }
 0x187   : > { %402 = shalt.err (!%p399_p7)
}
 0x188   : > { %s403_s26 = scalar_lea.hbm %s613_s16, 128  ;;  %s407_s5 = scalar_lea.hbm %s659_s2, 256 }
 0x189   : > { %p404_p8 = scmp.ne.s32.totalorder %s613_s16, %s403_s26  ;;  %p408_p3 = scmp.lt.u32.totalorder %s613_s16, %s659_s2 }
 0x18a   : > { %p409_p4 = scmp.lt.u32.totalorder %s407_s5, %s403_s26  ;;  %p411_p9 = scmp.lt.u32.totalorder %s403_s26, %s613_s16 }
 0x18b   : > { %p405_p11 = pnand %p404_p8, %p668_p0 }
 0x18c   : > { %p410_p6 = por %p409_p4, %p408_p3 }
 0x18d   : > { %p406_p12 = pneg %p405_p11 }
 0x18e   : > { %p412_p1 = por %p411_p9, %p410_p6 }
 0x190   : > { %p413_p2 = pnand %p412_p1, %p406_p12 }
 0x192   : > { %416 = shalt.err (!%p413_p2)
}
 0x193   : > { %295 = dma.vmem_to_hbm [thread:$0]  (%p668_p0), %s615_s13, 128, %s613_s16, %s190_s17  }
 0x194 PF: > { %s216_s8 = sand.u32 1, %s445_s19   ;;  %p669_p10 = scmp.ne.s32.totalorder %s664_s3, 0 }
 0x195   : > { %p670_p13 = scmp.ge.s32.totalorder %s457_s22, 2  ;;  %s217_s9 = scalar_lea.sflag [#allocation7], %s216_s8 }
 0x197   : > { %p302_p5 = pnand %p670_p13, %p669_p10 }
 0x199   : > { %440 = dma.done.wait (!%p302_p5), %s217_s9, 128  }
 0x19a   : > { %442 = vsyncadd (!%p302_p5), %s217_s9, 4294967168  ;;  %p19_p7 = scmp.ge.s32.totalorder %s517_s24, 4   ;;  %s671_s19 = smov %s449_s20 }
 0x19b   : > { %s672_s20 = smov %s453_s21  ;;  %s673_s21 = smov %s529_s27 }
 0x19c   : > { %s674_s22 = smov %s517_s24  ;;  %21 = sbr.rel (!%p19_p7) target bundleno = 17 (0x11), region = 69 }
 0x1a3   :  { %222 = vsyncpa [#allocation6], 1 }
 0x1a4   :  { %224 = vsyncpa [#allocation6 + $0x1], 1 }
 0x1a5   :  { %225 = vsyncpa [#allocation7], 1 }
 0x1a6   :  { %227 = vsyncpa [#allocation7 + $0x1], 1 }

</bundles_post_ra>
